<compile_context>
chip_gen: v5e
topology: v5e:2x2
jax: 0.10.0
libtpu: 0.0.40
codegen_flags: <defaults>
</compile_context>

<pallas_src>
import math
from functools import partial

import jax
import jax.numpy as jnp
from jax.experimental import pallas as pl


def _make_kernel(prior_prob):
    log_p = math.log(prior_prob)
    log_1mp = math.log1p(-prior_prob)

    def kernel(q_ref, g_ref, gamma_ref, kl_ref):
        q = q_ref[...]                       # (R, C) logits == flattened q_gamma_params
        lp0 = jax.nn.log_sigmoid(q)          # log sigmoid(q)  = log q_prob        (1 softplus)
        lp1 = lp0 - q                        # log sigmoid(-q) via identity        (no EUP op)

        # ---- gumbel_softmax(p_log, hard=True, dim=0) -> take channel 0 ----
        # Hard forward value is the one-hot argmax over the 2-way stack; argmax is invariant
        # under division by tau > 0, so the temperature divide is dropped entirely.
        # Ties resolve to channel 0, matching torch argmax.
        gamma_ref[...] = jnp.where(lp0 + g_ref[0] >= lp1 + g_ref[1], 1.0, 0.0)

        # ---- KL( Bernoulli(sigmoid(q)) || Bernoulli(prior_prob) ), summed -> (1, 1) ----
        qprob = jnp.exp(lp0)                 # sigmoid(q) == self.q_probs          (1 exp)
        kl = qprob * (lp0 - log_p) + (1.0 - qprob) * (lp1 - log_1mp)
        kl_ref[...] = jnp.sum(kl, keepdims=True)

    return kernel


@partial(jax.jit, static_argnames=("prior_prob",))
def perturbation_indicators_forward(q_gamma_params, gumbels, concrete_temperature, prior_prob):
    """Returns (gamma, KL) matching PerturbationIndicators.forward given fixed gumbel noise.

    q_gamma_params : (K, P) f32 logits  (K = num_assemblages, P = num_perturbations)
    gumbels        : (2, K, P) standard Gumbel noise for the 2-way relaxed categorical
    concrete_temperature : unused by the hard forward value (argmax is tau-invariant); kept
                           for API parity with the PyTorch module.
    """
    del concrete_temperature  # hard gumbel-softmax forward value does not depend on tau > 0
    K, P = q_gamma_params.shape
    N = K * P
    # Lane-dense layout; sublane-dense slab when N is a multiple of 128 (scales cleanly).
    cols = 128 if N % 128 == 0 else N
    rows = N // cols
    kernel = _make_kernel(float(prior_prob))

    # Wrapper-side layout plumbing (fused by jit; avoids any in-kernel reshape/relayout).
    q2 = q_gamma_params.reshape(rows, cols).astype(jnp.float32)
    g2 = gumbels.reshape(2, rows, cols).astype(jnp.float32)    # single operand, 1 DMA

    gamma2, kl = pl.pallas_call(
        kernel,
        out_shape=(jax.ShapeDtypeStruct((rows, cols), jnp.float32),  # gamma (flattened)
                   jax.ShapeDtypeStruct((1, 1), jnp.float32)),       # KL sum (scalar)
        in_specs=[
            pl.BlockSpec((rows, cols), lambda: (0, 0)),        # q logits
            pl.BlockSpec((2, rows, cols), lambda: (0, 0, 0)),  # gumbel noise, both channels
        ],
        out_specs=(
            pl.BlockSpec((rows, cols), lambda: (0, 0)),
            pl.BlockSpec((1, 1), lambda: (0, 0)),
        ),
    )(q2, g2)

    return gamma2.reshape(K, P), kl[0, 0]


def reference_forward(q_gamma_params, gumbels, concrete_temperature, prior_prob):
    """Pure-JAX mirror of the PyTorch forward (stack / divide-by-tau / argmax path)."""
    p_log = jnp.stack((jax.nn.log_sigmoid(q_gamma_params),
                       jax.nn.log_sigmoid(-q_gamma_params)))       # (2, K, P)
    y = (p_log + gumbels) / concrete_temperature
    gamma = (jnp.argmax(y, axis=0) == 0).astype(jnp.float32)       # hard one-hot, channel 0

    q = jax.nn.sigmoid(q_gamma_params)
    kl = (q * (jax.nn.log_sigmoid(q_gamma_params) - jnp.log(prior_prob))
          + (1.0 - q) * (jax.nn.log_sigmoid(-q_gamma_params) - jnp.log(1.0 - prior_prob)))
    return gamma, kl.sum()


if __name__ == "__main__":
    # Small shapes consistent with the module; K * P = 128 -> one full 128-lane row.
    num_assemblages, num_perturbations = 32, 4
    prior_prob = 0.1
    start_temp, end_temp = 0.5, 0.01

    # AnnealedParameter.set_temp(epoch=0, num_epochs=100): percent < 0.1 -> start_temp.
    concrete_temperature = start_temp

    key = jax.random.PRNGKey(0)
    kq, kg = jax.random.split(key)
    # torch.nn.init.uniform_ -> U(0, 1) logits.
    q_gamma_params = jax.random.uniform(
        kq, (num_assemblages, num_perturbations), dtype=jnp.float32)
    # Standard Gumbel noise (matches torch's -empty.exponential_().log()).
    gumbels = jax.random.gumbel(
        kg, (2, num_assemblages, num_perturbations), dtype=jnp.float32)

    gamma, kl = perturbation_indicators_forward(
        q_gamma_params, gumbels, concrete_temperature, prior_prob)
    jax.block_until_ready((gamma, kl))

    gamma_ref, kl_ref = reference_forward(
        q_gamma_params, gumbels, concrete_temperature, prior_prob)

    assert gamma.shape == (num_assemblages, num_perturbations)
    assert bool(jnp.all((gamma == 0.0) | (gamma == 1.0)))
    assert jnp.array_equal(gamma, gamma_ref), (gamma, gamma_ref)
    assert jnp.allclose(kl, kl_ref, rtol=1e-5, atol=1e-5), (kl, kl_ref)

    print("KERNEL_OK")
</pallas_src>

<mosaic_0001>
module attributes {stable_mosaic.version = 11 : i64} {
  func.func @kernel(%arg0: memref<1x128xf32, #tpu.memory_space<vmem>>, %arg1: memref<2x1x128xf32, #tpu.memory_space<vmem>>, %arg2: memref<1x128xf32, #tpu.memory_space<vmem>>, %arg3: memref<1x1xf32, #tpu.memory_space<vmem>>) attributes {dimension_semantics = [], scalar_prefetch = 0 : i64, scratch_operands = 0 : i64, tpu.core_type = #tpu.core_type<tc>} {
    %c0 = arith.constant 0 : index
    %c0_0 = arith.constant 0 : index
    %0 = vector.load %arg0[%c0, %c0_0] : memref<1x128xf32, #tpu.memory_space<vmem>>, vector<1x128xf32>
    %cst = arith.constant 0.000000e+00 : f32
    %1 = vector.broadcast %cst : f32 to vector<1x128xf32>
    %2 = arith.subf %1, %0 : vector<1x128xf32>
    %cst_1 = arith.constant 0.000000e+00 : f32
    %3 = vector.broadcast %cst_1 : f32 to vector<1x128xf32>
    %4 = arith.maximumf %2, %3 : vector<1x128xf32>
    %5 = vector.broadcast %cst_1 : f32 to vector<1x128xf32>
    %6 = arith.subf %2, %5 : vector<1x128xf32>
    %7 = arith.cmpf one, %6, %6 : vector<1x128xf32>
    %8 = vector.broadcast %cst_1 : f32 to vector<1x128xf32>
    %9 = arith.addf %2, %8 : vector<1x128xf32>
    %10 = math.absf %6 : vector<1x128xf32>
    %cst_2 = arith.constant 0.000000e+00 : f32
    %11 = vector.broadcast %cst_2 : f32 to vector<1x128xf32>
    %12 = arith.subf %11, %10 : vector<1x128xf32>
    %13 = math.exp %12 : vector<1x128xf32>
    %14 = math.log1p %13 : vector<1x128xf32>
    %15 = arith.addf %4, %14 : vector<1x128xf32>
    %16 = arith.select %7, %9, %15 : vector<1x128xi1>, vector<1x128xf32>
    %cst_3 = arith.constant 0.000000e+00 : f32
    %17 = vector.broadcast %cst_3 : f32 to vector<1x128xf32>
    %18 = arith.subf %17, %16 : vector<1x128xf32>
    %19 = arith.subf %18, %0 : vector<1x128xf32>
    %c0_4 = arith.constant 0 : index
    %c0_5 = arith.constant 0 : index
    %c0_6 = arith.constant 0 : index
    %20 = vector.load %arg1[%c0_4, %c0_5, %c0_6] : memref<2x1x128xf32, #tpu.memory_space<vmem>>, vector<1x1x128xf32>
    %21 = vector.shape_cast %20 : vector<1x1x128xf32> to vector<1x128xf32>
    %22 = arith.addf %18, %21 : vector<1x128xf32>
    %c1 = arith.constant 1 : index
    %c0_7 = arith.constant 0 : index
    %c0_8 = arith.constant 0 : index
    %23 = vector.load %arg1[%c1, %c0_7, %c0_8] : memref<2x1x128xf32, #tpu.memory_space<vmem>>, vector<1x1x128xf32>
    %24 = vector.shape_cast %23 : vector<1x1x128xf32> to vector<1x128xf32>
    %25 = arith.addf %19, %24 : vector<1x128xf32>
    %26 = arith.cmpf oge, %22, %25 : vector<1x128xf32>
    %cst_9 = arith.constant 1.000000e+00 : f32
    %cst_10 = arith.constant 0.000000e+00 : f32
    %27 = vector.broadcast %cst_9 : f32 to vector<1x128xf32>
    %28 = vector.broadcast %cst_10 : f32 to vector<1x128xf32>
    %29 = arith.select %26, %27, %28 : vector<1x128xi1>, vector<1x128xf32>
    %c0_11 = arith.constant 0 : index
    %c0_12 = arith.constant 0 : index
    %30 = vector.load %arg2[%c0_11, %c0_12] : memref<1x128xf32, #tpu.memory_space<vmem>>, vector<1x128xf32>
    tpu.vector_store %arg2[%c0_11, %c0_12], %29 {strides = array<i32>} : memref<1x128xf32, #tpu.memory_space<vmem>>, vector<1x128xf32>,
    %31 = math.exp %18 : vector<1x128xf32>
    %cst_13 = arith.constant -2.30258512 : f32
    %32 = vector.broadcast %cst_13 : f32 to vector<1x128xf32>
    %33 = arith.subf %18, %32 : vector<1x128xf32>
    %34 = arith.mulf %31, %33 : vector<1x128xf32>
    %cst_14 = arith.constant 1.000000e+00 : f32
    %35 = vector.broadcast %cst_14 : f32 to vector<1x128xf32>
    %36 = arith.subf %35, %31 : vector<1x128xf32>
    %cst_15 = arith.constant -0.105360515 : f32
    %37 = vector.broadcast %cst_15 : f32 to vector<1x128xf32>
    %38 = arith.subf %19, %37 : vector<1x128xf32>
    %39 = arith.mulf %36, %38 : vector<1x128xf32>
    %40 = arith.addf %34, %39 : vector<1x128xf32>
    %41 = vector.shape_cast %40 : vector<1x128xf32> to vector<1x1x128xf32>
    %cst_16 = arith.constant dense<0.000000e+00> : vector<1xf32>
    %42 = vector.multi_reduction <add>, %41, %cst_16 [1, 2] : vector<1x1x128xf32> to vector<1xf32>
    %43 = vector.shape_cast %42 : vector<1xf32> to vector<1x1x1xf32>
    %44 = vector.extract %43[0, 0, 0] : f32 from vector<1x1x1xf32>
    %45 = vector.broadcast %44 : f32 to vector<1x1xf32>
    %c0_17 = arith.constant 0 : index
    %c0_18 = arith.constant 0 : index
    %46 = vector.load %arg3[%c0_17, %c0_18] : memref<1x1xf32, #tpu.memory_space<vmem>>, vector<1x1xf32>
    tpu.vector_store %arg3[%c0_17, %c0_18], %45 {strides = array<i32>} : memref<1x1xf32, #tpu.memory_space<vmem>>, vector<1x1xf32>,
    return
  }
}

</mosaic_0001>

<bundles_post_ra>
// kernel: perturbation_indicators_forward.1
= control target key start
LH: loop header
LB: loop body
LE: loop exit
PB: predicated region body
PF: predicated region fallthrough
CT: control target
= control target key end

     0   :  { %s162_s0 = inlined_call_operand.vmem [shape: f32[1,128], index: 0, kind: input, shape index: {}]   ;;  %s163_s1 = inlined_call_operand.vmem [shape: f32[2,1,128], index: 1, kind: input, shape index: {}]   ;;  %s164_s2 = inlined_call_operand.vmem [shape: f32[1,128], index: 2, kind: output, shape index: {0}]   ;;  %s165_s3 = inlined_call_operand.hbm [shape: f32[1,1], index: 3, kind: output, shape index: {1}]  }
   0x1   :  { %v14_v0 = vld [vmem:[%s162_s0] sm:$0x1] }
   0x2   :  { %9 = vsyncpa [#allocation3], 0  ;;  %v15_v1 = vsub.f32 0.0, %v14_v0  ;;  %v36_v17 = vld [vmem:[%s163_s1] sm:$0x1]  ;;  %v125_v24 = vmov 0.0  }
   0x3   :  { %v86_v19 = vld [vmem:[%s163_s1 + $0x1] sm:$0x1]  ;;  %vm52_vm3 = vcmask 1040384   ;;  %s126_s1 = smov [#allocation2]   ;;  %s75_s21 = sshll.u32 %s165_s3, 4  ;;  %vm64_vm4 = vcmask 0   ;;  %s76_s21 = int_to_ptr.hbm [resolvable:$true] %s75_s21 }
   0x4   :  { %v19_v2 = vand.u32 2147483647, %v15_v1  ;;  %v16_v12 = vmax.f32 %v15_v1, 0.0  ;;  %vm17_vm1 = vcmp.ne.f32.partialorder %v15_v1, %v15_v1  ;;  %s73_s19 = sshll.u32 %s126_s1, 4  ;;  %s74_s19 = int_to_ptr.vmem [resolvable:$true] %s73_s19 }
   0x6   :  { %v20_v3 = vsub.f32 0.0, %v19_v2 }
   0x8   :  { %v21_v4 = vmul.f32 1.442695, %v20_v3 }
   0xa   :  { %93 = vpow2.f32 %v21_v4 }
  0x10   :  { %v94_v5 = vpop.eup %93 }
  0x11   :  { %v23_v6 = vadd.f32 1.0, %v94_v5  ;;  %v26_v7 = vmul.f32 -0.5, %v94_v5  ;;  %v29_v9 = vand.u32 2147483647, %v94_v5 }
  0x13   :  { %95 = vlog2.f32 %v23_v6  ;;  %v27_v8 = vadd.f32 1.0, %v26_v7  ;;  %vm30_vm0 = vcmp.lt.f32.partialorder %v29_v9, 0.0004427343 }
  0x15   :  { %v28_v10 = vmul.f32 %v94_v5, %v27_v8 }
  0x19   :  { %v96_v11 = vpop.eup %95 }
  0x1a   :  { %v25_v13 = vmul.f32 0.6931472, %v96_v11 }
  0x1c   :  { %v31_v14 = vsel %vm30_vm0, %v28_v10, %v25_v13 }
  0x1d   :  { %v32_v15 = vadd.f32 %v31_v14, %v16_v12 }
  0x1f   :  { %v33_v16 = vsel %vm17_vm1, %v15_v1, %v32_v15 }
  0x20   :  { %v34_v18 = vsub.f32 0.0, %v33_v16 }
  0x22   :  { %v35_v20 = vsub.f32 %v34_v18, %v14_v0  ;;  %v37_v21 = vadd.f32 %v36_v17, %v34_v18  ;;  %v44_v22 = vmul.f32 1.442695, %v34_v18  ;;  %v87_v26 = vadd.f32 2.3025851, %v34_v18 }
  0x24   :  { %v40_v23 = vadd.f32 %v86_v19, %v35_v20  ;;  %97 = vpow2.f32 %v44_v22  ;;  %v88_v27 = vadd.f32 0.105360515, %v35_v20 }
  0x26   :  { %vm41_vm2 = vcmp.ge.f32.partialorder %v37_v21, %v40_v23 }
  0x27   :  { %v42_v25 = vsel %vm41_vm2, 1.0, %v125_v24 }
  0x28   :  { %43 = vst [vmem:[%s164_s2] sm:$0x1] %v42_v25 }
  0x2a   :  { %v98_v28 = vpop.eup %97 }
  0x2b   :  { %v47_v29 = vmul.f32 %v98_v28, %v87_v26  ;;  %v48_v30 = vsub.f32 1.0, %v98_v28 }
  0x2d   :  { %v50_v31 = vmul.f32 %v88_v27, %v48_v30 }
  0x2f   :  { %v51_v32 = vadd.f32 %v50_v31, %v47_v29 }
  0x31   :  { %v53_v33 = vsel %vm52_vm3, %v51_v32, 0.0 }
  0x32   :  { %54 = vadd.xlane.f32.xlu0 %v53_v33 }
  0xa5   :  { %v55_v34 = vpop.xlane.xlu0 %54 }
  0xa6   :  { %v56_v35 = vrot.slane %v55_v34, 4 }
  0xa8   :  { %v57_v36 = vadd.f32 %v56_v35, %v55_v34 }
  0xaa   :  { %v58_v37 = vrot.slane %v57_v36, 2 }
  0xac   :  { %v59_v38 = vadd.f32 %v58_v37, %v57_v36 }
  0xae   :  { %v60_v39 = vrot.slane %v59_v38, 1 }
  0xb0   :  { %v61_v40 = vadd.f32 %v60_v39, %v59_v38 }
  0xb2   :  { %89 = vpush %v61_v40 }
  0xe3   :  { %s90_s22 = spop %89 }
  0xe4   :  { %v63_v41 = vstv %s90_s22 }
  0xe5   :  { %65 = vst.msk [vmem:[#allocation2] sm:$0x1] %vm64_vm4, %v63_v41 }
  0xe6   :  { %78 = dma.vmem_to_hbm [thread:$0]  %s74_s19, 16, %s76_s21, [#allocation3]  }
  0xe7   :  { %123 = dma.done.wait [#allocation3], 16  }
  0xe8   :  { %124 = vsyncadd [#allocation3], 4294967280 }
  0xe9   :  { %85 = vsyncpa [#allocation3], 1 }

</bundles_post_ra>
